<compile_context>
chip_gen: v7x
topology: tpu7x:2x2x1
jax: 0.10.0
libtpu: 0.0.40
codegen_flags: <defaults>
</compile_context>

<pallas_src>
import math
from functools import partial

import jax
import jax.numpy as jnp
from jax import lax
from jax.experimental import pallas as pl
from jax.experimental.pallas import tpu as pltpu


# ---------------------------------------------------------------------------
# Kernel A: per-projection matmul + per-head fp32 LayerNorm (q/k), passthrough v
# ---------------------------------------------------------------------------
def _qkv_ln_kernel(x_ref, w_ref, qkv_ref, *, n_heads, head_dim, eps, scale):
    # x_ref:   [1, TL, D]      input activations
    # w_ref:   [D, D]   bf16   w{q,k,v}.T panel selected by grid axis j
    # qkv_ref: [1, TL, D]      slice j of the stacked [3, B, L, D] output
    j = pl.program_id(2)                         # 0 -> q, 1 -> k, 2 -> v

    x = x_ref[0].astype(jnp.bfloat16)            # bf16 MXU operand
    y = jnp.dot(x, w_ref[...], preferred_element_type=jnp.float32)   # [TL, D] f32

    @pl.when(j == 2)                             # v: plain projection
    def _():
        qkv_ref[0] = y.astype(qkv_ref.dtype)

    @pl.when(j < 2)                              # q / k: per-head fp32 LayerNorm
    def _():
        # Softmax scale is folded into q only.
        mult = jnp.where(j == 0, jnp.float32(scale), jnp.float32(1.0))
        # TODO(synk): for very large n_heads convert to lax.fori_loop with
        # pl.ds lane slices to bound live ranges.
        for h in range(n_heads):
            lo = h * head_dim
            t = y[:, lo:lo + head_dim]
            mu = jnp.mean(t, axis=-1, keepdims=True)
            var = jnp.mean(jnp.square(t - mu), axis=-1, keepdims=True)
            tn = (t - mu) * lax.rsqrt(var + eps) * mult
            # Direct per-head store into the output block (no concatenate).
            qkv_ref[0, :, lo:lo + head_dim] = tn.astype(qkv_ref.dtype)


# ---------------------------------------------------------------------------
# Kernel B: flash attention (online softmax over KV tiles) + fused w1o
# ---------------------------------------------------------------------------
def _flash_attn_kernel(q_ref, k_ref, v_ref, wo_ref, o_ref,
                       m_sc, l_sc, acc_sc, attn_sc, *, n_heads, head_dim):
    # q_ref:  [1, TQ, D]  bf16 (LayerNormed, pre-scaled by 1/sqrt(head_dim))
    # k_ref:  [1, TKV, D] bf16; v_ref: [1, TKV, D] bf16; wo_ref: [D, D] bf16
    # o_ref:  [1, TQ, D]
    # Scratch: m_sc/l_sc [H, TQ, 1] fp32 (trailing dim pads to 128 lanes anyway),
    #          acc_sc [H, TQ, Hd] fp32, attn_sc [TQ, D] bf16 (staged heads).
    ki = pl.program_id(2)

    @pl.when(ki == 0)
    def _():
        m_sc[...] = jnp.full_like(m_sc, -jnp.inf)
        l_sc[...] = jnp.zeros_like(l_sc)
        acc_sc[...] = jnp.zeros_like(acc_sc)

    q = q_ref[0]                                 # [TQ, D]  bf16
    k = k_ref[0]                                 # [TKV, D] bf16
    v = v_ref[0]                                 # [TKV, D] bf16

    for h in range(n_heads):
        lo = h * head_dim
        qh = q[:, lo:lo + head_dim]              # [TQ, Hd]
        kh = k[:, lo:lo + head_dim]              # [TKV, Hd]
        vh = v[:, lo:lo + head_dim]              # [TKV, Hd]

        # q @ k^T without materializing a transpose: contract dim 1 with dim 1.
        s = lax.dot_general(qh, kh, (((1,), (1,)), ((), ())),
                            preferred_element_type=jnp.float32)   # [TQ, TKV] f32

        m_prev = m_sc[h]                                          # [TQ, 1]
        m_new = jnp.maximum(m_prev, jnp.max(s, axis=-1, keepdims=True))
        alpha = jnp.exp(m_prev - m_new)
        p = jnp.exp(s - m_new)
        l_sc[h] = alpha * l_sc[h] + jnp.sum(p, axis=-1, keepdims=True)
        acc_sc[h] = alpha * acc_sc[h] + jnp.dot(
            p.astype(jnp.bfloat16), vh, preferred_element_type=jnp.float32)
        m_sc[h] = m_new

    @pl.when(ki == pl.num_programs(2) - 1)
    def _():
        # Normalize (approx reciprocal -> EUP slot), stage heads into a
        # lane-aligned bf16 VMEM scratch (no register concat), then one fused
        # MXU pass with the output projection.
        for h in range(n_heads):
            lo = h * head_dim
            attn_sc[:, lo:lo + head_dim] = (
                acc_sc[h] * pl.reciprocal(l_sc[h], approx=True)
            ).astype(attn_sc.dtype)
        out = jnp.dot(attn_sc[...], wo_ref[...],
                      preferred_element_type=jnp.float32)
        o_ref[0] = out.astype(o_ref.dtype)


# ---------------------------------------------------------------------------
# Wrapper
# ---------------------------------------------------------------------------
def _generation_defaults():
    """Generation-aware (block_l, block_q, block_kv, vmem_limit_bytes)."""
    try:
        kind = jax.devices()[0].device_kind.lower()
    except Exception:
        kind = ""
    mib = 1024 * 1024
    if "v5" in kind:
        # v5e: already MXU-bound at tq=256; 128 MiB physical VMEM.
        return 256, 256, 256, 100 * mib
    if "v6" in kind:
        # v6e: ~640 flop/B needed to be MXU-bound -> larger q tiles.
        return 256, 512, 256, 100 * mib
    # v7x (64 MiB per-TC VMEM) and unknown chips: conservative limits.
    return 256, 256, 256, 52 * mib


def single_attention_pallas(condition, wq, wk, wv, wo, *, n_heads, eps=1e-5,
                            block_l=None, block_q=None, block_kv=None,
                            vmem_limit_bytes=None, out_dtype=None):
    """condition: [B, L, D]; wq/wk/wv/wo: torch-style [D, D] weights (y = x @ W.T)."""
    B, L, D = condition.shape
    assert D % n_heads == 0
    head_dim = D // n_heads
    scale = 1.0 / math.sqrt(head_dim)

    d_bl, d_bq, d_bkv, d_vmem = _generation_defaults()
    tl = min(block_l or d_bl, L)
    tq = min(block_q or d_bq, L)
    tkv = min(block_kv or d_bkv, L)
    vmem_limit_bytes = vmem_limit_bytes or d_vmem
    out_dtype = out_dtype or condition.dtype   # pass bf16 to halve writeback traffic
    assert L % tl == 0 and L % tq == 0 and L % tkv == 0, \
        "L must be divisible by the tile sizes (caller pads ragged sequences)."

    # One-time glue (plain XLA): stack the pre-transposed projection weights
    # into a [3, D, D] bf16 slab so Kernel A streams one (D, D) panel per step.
    wqkv_t = jnp.stack([wq.T, wk.T, wv.T], axis=0).astype(jnp.bfloat16)
    wo_t = wo.T.astype(jnp.bfloat16)

    # --- Kernel A: QKV projection + per-head fp32 LayerNorm (+ scale fold) ----
    qkv = pl.pallas_call(
        partial(_qkv_ln_kernel, n_heads=n_heads, head_dim=head_dim,
                eps=eps, scale=scale),
        out_shape=jax.ShapeDtypeStruct((3, B, L, D), jnp.bfloat16),
        grid_spec=pltpu.PrefetchScalarGridSpec(
            num_scalar_prefetch=0,
            grid=(B, L // tl, 3),
            in_specs=[
                # x block index is independent of j -> stays resident across
                # the three projection steps (no re-DMA).
                pl.BlockSpec((1, tl, D), lambda b, l, j: (b, l, 0)),
                # One (D, D) weight panel per projection; default double
                # buffering overlaps the next panel's DMA with this LN.
                pl.BlockSpec((None, D, D), lambda b, l, j: (j, 0, 0)),
            ],
            out_specs=pl.BlockSpec((None, 1, tl, D),
                                   lambda b, l, j: (j, b, l, 0)),
        ),
        compiler_params=pltpu.CompilerParams(
            dimension_semantics=("parallel", "parallel", "arbitrary"),
            vmem_limit_bytes=vmem_limit_bytes),
    )(condition, wqkv_t)

    # --- Kernel B: flash attention over KV tiles + fused output projection ---
    kernel_b = partial(_flash_attn_kernel, n_heads=n_heads, head_dim=head_dim)
    scratch = [
        pltpu.VMEM((n_heads, tq, 1), jnp.float32),          # running max
        pltpu.VMEM((n_heads, tq, 1), jnp.float32),          # running sum
        pltpu.VMEM((n_heads, tq, head_dim), jnp.float32),   # running acc
        pltpu.VMEM((tq, D), jnp.bfloat16),                  # staged heads
    ]

    def _attn_call(wo_pipeline_mode):
        if wo_pipeline_mode is None:
            wo_spec = pl.BlockSpec((D, D), lambda b, qi, ki: (0, 0))
        else:
            wo_spec = pl.BlockSpec((D, D), lambda b, qi, ki: (0, 0),
                                   pipeline_mode=wo_pipeline_mode)
        return pl.pallas_call(
            kernel_b,
            out_shape=jax.ShapeDtypeStruct((B, L, D), out_dtype),
            grid_spec=pltpu.PrefetchScalarGridSpec(
                num_scalar_prefetch=0,
                grid=(B, L // tq, L // tkv),
                in_specs=[
                    pl.BlockSpec((None, 1, tq, D),
                                 lambda b, qi, ki: (0, b, qi, 0)),
                    pl.BlockSpec((None, 1, tkv, D),
                                 lambda b, qi, ki: (1, b, ki, 0)),
                    pl.BlockSpec((None, 1, tkv, D),
                                 lambda b, qi, ki: (2, b, ki, 0)),
                    wo_spec,
                ],
                out_specs=pl.BlockSpec((1, tq, D), lambda b, qi, ki: (b, qi, 0)),
                scratch_shapes=scratch,
            ),
            compiler_params=pltpu.CompilerParams(
                dimension_semantics=("parallel", "parallel", "arbitrary"),
                vmem_limit_bytes=vmem_limit_bytes),
        )(qkv, qkv, qkv, wo_t)

    try:
        # Constant-index weight -> single pipeline buffer (halves resident
        # wo VMEM at zero DMA cost).
        return _attn_call(pl.Buffered(1))
    except Exception:
        # Fallback if this JAX build rejects single-buffered pipeline_mode.
        return _attn_call(None)


# ---------------------------------------------------------------------------
# Pure-JAX reference (mirrors the PyTorch forward)
# ---------------------------------------------------------------------------
def single_attention_ref(condition, wq, wk, wv, wo, *, n_heads, eps=1e-5,
                         mxu_dtype=None):
    """If `mxu_dtype` is given, matmul operands are cast to it at the same
    points as the kernel (numerics-matched to the bf16 MXU path); with None it
    is the exact fp32 module semantics."""
    B, L, D = condition.shape
    Hd = D // n_heads
    scale = 1.0 / math.sqrt(Hd)
    cast = (lambda t: t.astype(mxu_dtype)) if mxu_dtype is not None else (lambda t: t)

    x = cast(condition)
    q = jnp.dot(x, cast(wq.T), preferred_element_type=jnp.float32)
    k = jnp.dot(x, cast(wk.T), preferred_element_type=jnp.float32)
    v = jnp.dot(x, cast(wv.T), preferred_element_type=jnp.float32)
    q = q.reshape(B, L, n_heads, Hd)
    k = k.reshape(B, L, n_heads, Hd)
    v = v.reshape(B, L, n_heads, Hd)

    def ln(t):
        t = t.astype(jnp.float32)
        mu = t.mean(-1, keepdims=True)
        var = jnp.square(t - mu).mean(-1, keepdims=True)
        return (t - mu) * lax.rsqrt(var + eps)

    q, k = ln(q), ln(k)
    qh, kh, vh = (t.transpose(0, 2, 1, 3) for t in (q, k, v))     # BLHD -> BHLD
    s = jnp.einsum('bhqd,bhkd->bhqk', cast(qh * scale), cast(kh),
                   preferred_element_type=jnp.float32)
    p = jax.nn.softmax(s, axis=-1)
    out = jnp.einsum('bhqk,bhkd->bhqd', cast(p), cast(vh),
                     preferred_element_type=jnp.float32)
    out = out.transpose(0, 2, 1, 3).reshape(B, L, D)
    return jnp.dot(cast(out), cast(wo.T),
                   preferred_element_type=jnp.float32).astype(condition.dtype)


if __name__ == "__main__":
    # Small but multi-tile: with 16-wide blocks Kernel A runs 2 L-tiles x 3
    # projection steps and Kernel B runs 2 query tiles x 2 KV steps per batch
    # element, exercising the online-softmax carry and the j-dispatch.
    B, L, D, H = 2, 32, 32, 4

    key = jax.random.PRNGKey(0)
    kx, kq, kk, kv, ko = jax.random.split(key, 5)
    condition = jax.random.normal(kx, (B, L, D), dtype=jnp.float32)
    # torch.nn.Linear weight shape is [out, in] = [D, D].
    wq = jax.random.normal(kq, (D, D), dtype=jnp.float32) * (1.0 / math.sqrt(D))
    wk = jax.random.normal(kk, (D, D), dtype=jnp.float32) * (1.0 / math.sqrt(D))
    wv = jax.random.normal(kv, (D, D), dtype=jnp.float32) * (1.0 / math.sqrt(D))
    wo = jax.random.normal(ko, (D, D), dtype=jnp.float32) * (1.0 / math.sqrt(D))

    out = single_attention_pallas(condition, wq, wk, wv, wo, n_heads=H,
                                  block_l=16, block_q=16, block_kv=16)
    out = jax.block_until_ready(out)
    assert out.shape == (B, L, D)

    # Tight check vs a reference that models the kernel's bf16 MXU operands
    # exactly (remaining delta: accumulation order / approximate reciprocal).
    ref_matched = single_attention_ref(condition, wq, wk, wv, wo, n_heads=H,
                                       mxu_dtype=jnp.bfloat16)
    assert jnp.allclose(out, ref_matched, atol=2e-2, rtol=2e-2), \
        "mismatch vs bf16-matched reference"

    # Loose sanity check vs the exact fp32 module semantics (only difference is
    # bf16 rounding of MXU operands).
    ref_fp32 = single_attention_ref(condition, wq, wk, wv, wo, n_heads=H)
    assert jnp.allclose(out, ref_fp32, atol=1.5e-1, rtol=1.5e-1), \
        "mismatch vs fp32 reference"

    print("KERNEL_OK")
</pallas_src>

<mosaic_0001>
module attributes {stable_mosaic.version = 11 : i64} {
  func.func @_qkv_ln_kernel(%arg0: i32, %arg1: i32, %arg2: i32, %arg3: memref<1x16x32xf32, #tpu.memory_space<vmem>>, %arg4: memref<1x32x32xbf16, #tpu.memory_space<vmem>>, %arg5: memref<1x1x16x32xbf16, #tpu.memory_space<vmem>>) attributes {dimension_semantics = [#tpu.dimension_semantics<parallel>, #tpu.dimension_semantics<parallel>, #tpu.dimension_semantics<arbitrary>], iteration_bounds = array<i64: 2, 2, 3>, scalar_prefetch = 0 : i64, scratch_operands = 0 : i64, tpu.core_type = #tpu.core_type<tc>, window_params = [{transform_indices = @transform_0, window_bounds = array<i64: 1, 16, 32>}, {transform_indices = @transform_1, window_bounds = array<i64: 1, 32, 32>}, {transform_indices = @transform_2, window_bounds = array<i64: 1, 1, 16, 32>}]} {
    %c0 = arith.constant 0 : index
    %c0_0 = arith.constant 0 : index
    %c0_1 = arith.constant 0 : index
    %0 = vector.load %arg3[%c0, %c0_0, %c0_1] : memref<1x16x32xf32, #tpu.memory_space<vmem>>, vector<1x16x32xf32>
    %1 = vector.shape_cast %0 : vector<1x16x32xf32> to vector<16x32xf32>
    %2 = arith.truncf %1 : vector<16x32xf32> to vector<16x32xbf16>
    %c0_2 = arith.constant 0 : index
    %c0_3 = arith.constant 0 : index
    %c0_4 = arith.constant 0 : index
    %3 = vector.load %arg4[%c0_2, %c0_3, %c0_4] : memref<1x32x32xbf16, #tpu.memory_space<vmem>>, vector<1x32x32xbf16>
    %4 = vector.shape_cast %3 : vector<1x32x32xbf16> to vector<32x32xbf16>
    %cst = arith.constant dense<0.000000e+00> : vector<16x32xf32>
    %5 = tpu.matmul %2, %4, %cst {dimension_numbers = #tpu.dot_dimension_numbers<[1], [0], [0], [1], [0, 0, 1, 1], [], []>} : vector<16x32xbf16>, vector<32x32xbf16>, vector<16x32xf32> -> vector<16x32xf32>
    %c2_i32 = arith.constant 2 : i32
    %6 = arith.cmpi eq, %arg2, %c2_i32 : i32
    %7 = arith.extui %6 : i1 to i32
    %c0_i32 = arith.constant 0 : i32
    %8 = arith.cmpi ne, %7, %c0_i32 : i32
    scf.if %8 {
      %12 = arith.truncf %5 : vector<16x32xf32> to vector<16x32xbf16>
      %c0_7 = arith.constant 0 : index
      %c0_8 = arith.constant 0 : index
      %c0_9 = arith.constant 0 : index
      %c0_10 = arith.constant 0 : index
      %13 = vector.load %arg5[%c0_7, %c0_8, %c0_9, %c0_10] : memref<1x1x16x32xbf16, #tpu.memory_space<vmem>>, vector<1x1x16x32xbf16>
      %14 = vector.shape_cast %13 : vector<1x1x16x32xbf16> to vector<16x32xbf16>
      %15 = vector.shape_cast %12 : vector<16x32xbf16> to vector<1x1x16x32xbf16>
      tpu.vector_store %arg5[%c0_7, %c0_8, %c0_9, %c0_10], %15 {strides = array<i32>} : memref<1x1x16x32xbf16, #tpu.memory_space<vmem>>, vector<1x1x16x32xbf16>,
    } else {
    }
    %c2_i32_5 = arith.constant 2 : i32
    %9 = arith.cmpi slt, %arg2, %c2_i32_5 : i32
    %10 = arith.extui %9 : i1 to i32
    %c0_i32_6 = arith.constant 0 : i32
    %11 = arith.cmpi ne, %10, %c0_i32_6 : i32
    scf.if %11 {
      %c0_i32_7 = arith.constant 0 : i32
      %12 = arith.cmpi eq, %arg2, %c0_i32_7 : i32
      %cst_8 = arith.constant 0.353553385 : f32
      %cst_9 = arith.constant 1.000000e+00 : f32
      %13 = arith.select %12, %cst_8, %cst_9 : f32
      %14 = vector.extract_strided_slice %5 {offsets = [0, 0], sizes = [16, 8], strides = [1, 1]} : vector<16x32xf32> to vector<16x8xf32>
      %cst_10 = arith.constant dense<0.000000e+00> : vector<16xf32>
      %15 = vector.multi_reduction <add>, %14, %cst_10 [1] : vector<16x8xf32> to vector<16xf32>
      %16 = vector.shape_cast %15 : vector<16xf32> to vector<16x1xf32>
      %cst_11 = arith.constant 8.000000e+00 : f32
      %17 = vector.broadcast %cst_11 : f32 to vector<16x1xf32>
      %18 = arith.divf %16, %17 : vector<16x1xf32>
      %19 = vector.broadcast %18 : vector<16x1xf32> to vector<16x8xf32>
      %20 = arith.subf %14, %19 : vector<16x8xf32>
      %21 = arith.mulf %20, %20 : vector<16x8xf32>
      %cst_12 = arith.constant dense<0.000000e+00> : vector<16xf32>
      %22 = vector.multi_reduction <add>, %21, %cst_12 [1] : vector<16x8xf32> to vector<16xf32>
      %23 = vector.shape_cast %22 : vector<16xf32> to vector<16x1xf32>
      %cst_13 = arith.constant 8.000000e+00 : f32
      %24 = vector.broadcast %cst_13 : f32 to vector<16x1xf32>
      %25 = arith.divf %23, %24 : vector<16x1xf32>
      %26 = vector.broadcast %18 : vector<16x1xf32> to vector<16x8xf32>
      %27 = arith.subf %14, %26 : vector<16x8xf32>
      %cst_14 = arith.constant 9.99999974E-6 : f32
      %28 = vector.broadcast %cst_14 : f32 to vector<16x1xf32>
      %29 = arith.addf %25, %28 : vector<16x1xf32>
      %30 = math.rsqrt %29 : vector<16x1xf32>
      %31 = vector.broadcast %30 : vector<16x1xf32> to vector<16x8xf32>
      %32 = arith.mulf %27, %31 : vector<16x8xf32>
      %33 = vector.broadcast %13 : f32 to vector<16x8xf32>
      %34 = arith.mulf %32, %33 : vector<16x8xf32>
      %35 = arith.truncf %34 : vector<16x8xf32> to vector<16x8xbf16>
      %c0_15 = arith.constant 0 : index
      %c0_16 = arith.constant 0 : index
      %c0_17 = arith.constant 0 : index
      %c0_18 = arith.constant 0 : index
      %36 = vector.load %arg5[%c0_15, %c0_16, %c0_17, %c0_18] : memref<1x1x16x32xbf16, #tpu.memory_space<vmem>>, vector<1x1x16x8xbf16>
      %37 = vector.shape_cast %36 : vector<1x1x16x8xbf16> to vector<16x8xbf16>
      %38 = vector.shape_cast %35 : vector<16x8xbf16> to vector<1x1x16x8xbf16>
      tpu.vector_store %arg5[%c0_15, %c0_16, %c0_17, %c0_18], %38 {strides = array<i32>} : memref<1x1x16x32xbf16, #tpu.memory_space<vmem>>, vector<1x1x16x8xbf16>,
      %39 = vector.extract_strided_slice %5 {offsets = [0, 8], sizes = [16, 8], strides = [1, 1]} : vector<16x32xf32> to vector<16x8xf32>
      %cst_19 = arith.constant dense<0.000000e+00> : vector<16xf32>
      %40 = vector.multi_reduction <add>, %39, %cst_19 [1] : vector<16x8xf32> to vector<16xf32>
      %41 = vector.shape_cast %40 : vector<16xf32> to vector<16x1xf32>
      %cst_20 = arith.constant 8.000000e+00 : f32
      %42 = vector.broadcast %cst_20 : f32 to vector<16x1xf32>
      %43 = arith.divf %41, %42 : vector<16x1xf32>
      %44 = vector.broadcast %43 : vector<16x1xf32> to vector<16x8xf32>
      %45 = arith.subf %39, %44 : vector<16x8xf32>
      %46 = arith.mulf %45, %45 : vector<16x8xf32>
      %cst_21 = arith.constant dense<0.000000e+00> : vector<16xf32>
      %47 = vector.multi_reduction <add>, %46, %cst_21 [1] : vector<16x8xf32> to vector<16xf32>
      %48 = vector.shape_cast %47 : vector<16xf32> to vector<16x1xf32>
      %cst_22 = arith.constant 8.000000e+00 : f32
      %49 = vector.broadcast %cst_22 : f32 to vector<16x1xf32>
      %50 = arith.divf %48, %49 : vector<16x1xf32>
      %51 = vector.broadcast %43 : vector<16x1xf32> to vector<16x8xf32>
      %52 = arith.subf %39, %51 : vector<16x8xf32>
      %cst_23 = arith.constant 9.99999974E-6 : f32
      %53 = vector.broadcast %cst_23 : f32 to vector<16x1xf32>
      %54 = arith.addf %50, %53 : vector<16x1xf32>
      %55 = math.rsqrt %54 : vector<16x1xf32>
      %56 = vector.broadcast %55 : vector<16x1xf32> to vector<16x8xf32>
      %57 = arith.mulf %52, %56 : vector<16x8xf32>
      %58 = vector.broadcast %13 : f32 to vector<16x8xf32>
      %59 = arith.mulf %57, %58 : vector<16x8xf32>
      %60 = arith.truncf %59 : vector<16x8xf32> to vector<16x8xbf16>
      %c0_24 = arith.constant 0 : index
      %c0_25 = arith.constant 0 : index
      %c0_26 = arith.constant 0 : index
      %c8 = arith.constant 8 : index
      %61 = vector.load %arg5[%c0_24, %c0_25, %c0_26, %c8] : memref<1x1x16x32xbf16, #tpu.memory_space<vmem>>, vector<1x1x16x8xbf16>
      %62 = vector.shape_cast %61 : vector<1x1x16x8xbf16> to vector<16x8xbf16>
      %63 = vector.shape_cast %60 : vector<16x8xbf16> to vector<1x1x16x8xbf16>
      tpu.vector_store %arg5[%c0_24, %c0_25, %c0_26, %c8], %63 {strides = array<i32>} : memref<1x1x16x32xbf16, #tpu.memory_space<vmem>>, vector<1x1x16x8xbf16>,
      %64 = vector.extract_strided_slice %5 {offsets = [0, 16], sizes = [16, 8], strides = [1, 1]} : vector<16x32xf32> to vector<16x8xf32>
      %cst_27 = arith.constant dense<0.000000e+00> : vector<16xf32>
      %65 = vector.multi_reduction <add>, %64, %cst_27 [1] : vector<16x8xf32> to vector<16xf32>
      %66 = vector.shape_cast %65 : vector<16xf32> to vector<16x1xf32>
      %cst_28 = arith.constant 8.000000e+00 : f32
      %67 = vector.broadcast %cst_28 : f32 to vector<16x1xf32>
      %68 = arith.divf %66, %67 : vector<16x1xf32>
      %69 = vector.broadcast %68 : vector<16x1xf32> to vector<16x8xf32>
      %70 = arith.subf %64, %69 : vector<16x8xf32>
      %71 = arith.mulf %70, %70 : vector<16x8xf32>
      %cst_29 = arith.constant dense<0.000000e+00> : vector<16xf32>
      %72 = vector.multi_reduction <add>, %71, %cst_29 [1] : vector<16x8xf32> to vector<16xf32>
      %73 = vector.shape_cast %72 : vector<16xf32> to vector<16x1xf32>
      %cst_30 = arith.constant 8.000000e+00 : f32
      %74 = vector.broadcast %cst_30 : f32 to vector<16x1xf32>
      %75 = arith.divf %73, %74 : vector<16x1xf32>
      %76 = vector.broadcast %68 : vector<16x1xf32> to vector<16x8xf32>
      %77 = arith.subf %64, %76 : vector<16x8xf32>
      %cst_31 = arith.constant 9.99999974E-6 : f32
      %78 = vector.broadcast %cst_31 : f32 to vector<16x1xf32>
      %79 = arith.addf %75, %78 : vector<16x1xf32>
      %80 = math.rsqrt %79 : vector<16x1xf32>
      %81 = vector.broadcast %80 : vector<16x1xf32> to vector<16x8xf32>
      %82 = arith.mulf %77, %81 : vector<16x8xf32>
      %83 = vector.broadcast %13 : f32 to vector<16x8xf32>
      %84 = arith.mulf %82, %83 : vector<16x8xf32>
      %85 = arith.truncf %84 : vector<16x8xf32> to vector<16x8xbf16>
      %c0_32 = arith.constant 0 : index
      %c0_33 = arith.constant 0 : index
      %c0_34 = arith.constant 0 : index
      %c16 = arith.constant 16 : index
      %86 = vector.load %arg5[%c0_32, %c0_33, %c0_34, %c16] : memref<1x1x16x32xbf16, #tpu.memory_space<vmem>>, vector<1x1x16x8xbf16>
      %87 = vector.shape_cast %86 : vector<1x1x16x8xbf16> to vector<16x8xbf16>
      %88 = vector.shape_cast %85 : vector<16x8xbf16> to vector<1x1x16x8xbf16>
      tpu.vector_store %arg5[%c0_32, %c0_33, %c0_34, %c16], %88 {strides = array<i32>} : memref<1x1x16x32xbf16, #tpu.memory_space<vmem>>, vector<1x1x16x8xbf16>,
      %89 = vector.extract_strided_slice %5 {offsets = [0, 24], sizes = [16, 8], strides = [1, 1]} : vector<16x32xf32> to vector<16x8xf32>
      %cst_35 = arith.constant dense<0.000000e+00> : vector<16xf32>
      %90 = vector.multi_reduction <add>, %89, %cst_35 [1] : vector<16x8xf32> to vector<16xf32>
      %91 = vector.shape_cast %90 : vector<16xf32> to vector<16x1xf32>
      %cst_36 = arith.constant 8.000000e+00 : f32
      %92 = vector.broadcast %cst_36 : f32 to vector<16x1xf32>
      %93 = arith.divf %91, %92 : vector<16x1xf32>
      %94 = vector.broadcast %93 : vector<16x1xf32> to vector<16x8xf32>
      %95 = arith.subf %89, %94 : vector<16x8xf32>
      %96 = arith.mulf %95, %95 : vector<16x8xf32>
      %cst_37 = arith.constant dense<0.000000e+00> : vector<16xf32>
      %97 = vector.multi_reduction <add>, %96, %cst_37 [1] : vector<16x8xf32> to vector<16xf32>
      %98 = vector.shape_cast %97 : vector<16xf32> to vector<16x1xf32>
      %cst_38 = arith.constant 8.000000e+00 : f32
      %99 = vector.broadcast %cst_38 : f32 to vector<16x1xf32>
      %100 = arith.divf %98, %99 : vector<16x1xf32>
      %101 = vector.broadcast %93 : vector<16x1xf32> to vector<16x8xf32>
      %102 = arith.subf %89, %101 : vector<16x8xf32>
      %cst_39 = arith.constant 9.99999974E-6 : f32
      %103 = vector.broadcast %cst_39 : f32 to vector<16x1xf32>
      %104 = arith.addf %100, %103 : vector<16x1xf32>
      %105 = math.rsqrt %104 : vector<16x1xf32>
      %106 = vector.broadcast %105 : vector<16x1xf32> to vector<16x8xf32>
      %107 = arith.mulf %102, %106 : vector<16x8xf32>
      %108 = vector.broadcast %13 : f32 to vector<16x8xf32>
      %109 = arith.mulf %107, %108 : vector<16x8xf32>
      %110 = arith.truncf %109 : vector<16x8xf32> to vector<16x8xbf16>
      %c0_40 = arith.constant 0 : index
      %c0_41 = arith.constant 0 : index
      %c0_42 = arith.constant 0 : index
      %c24 = arith.constant 24 : index
      %111 = vector.load %arg5[%c0_40, %c0_41, %c0_42, %c24] : memref<1x1x16x32xbf16, #tpu.memory_space<vmem>>, vector<1x1x16x8xbf16>
      %112 = vector.shape_cast %111 : vector<1x1x16x8xbf16> to vector<16x8xbf16>
      %113 = vector.shape_cast %110 : vector<16x8xbf16> to vector<1x1x16x8xbf16>
      tpu.vector_store %arg5[%c0_40, %c0_41, %c0_42, %c24], %113 {strides = array<i32>} : memref<1x1x16x32xbf16, #tpu.memory_space<vmem>>, vector<1x1x16x8xbf16>,
    } else {
    }
    return
  }
  func.func @transform_0(%arg0: i32, %arg1: i32, %arg2: i32) -> (i32, i32, i32) {
    %c0_i32 = arith.constant 0 : i32
    %c0_i32_0 = arith.constant 0 : i32
    return %arg0, %arg1, %c0_i32 : i32, i32, i32
  }
  func.func @transform_1(%arg0: i32, %arg1: i32, %arg2: i32) -> (i32, i32, i32) {
    %c0_i32 = arith.constant 0 : i32
    %c0_i32_0 = arith.constant 0 : i32
    %c0_i32_1 = arith.constant 0 : i32
    return %arg2, %c0_i32, %c0_i32_0 : i32, i32, i32
  }
  func.func @transform_2(%arg0: i32, %arg1: i32, %arg2: i32) -> (i32, i32, i32, i32) {
    %c0_i32 = arith.constant 0 : i32
    %c0_i32_0 = arith.constant 0 : i32
    return %arg2, %arg0, %arg1, %c0_i32 : i32, i32, i32, i32
  }
}

</mosaic_0001>

<bundles_post_ra>
// kernel: tpu_custom_call.1
= control target key start
LH: loop header
LB: loop body
LE: loop exit
PB: predicated region body
PF: predicated region fallthrough
CT: control target
= control target key end

     0   :  { %s1635_s0 = inlined_call_operand.hbm [shape: f32[2,32,32], index: 0, kind: input, shape index: {}]   ;;  %s1636_s1 = inlined_call_operand.hbm [shape: bf16[3,32,32], index: 1, kind: input, shape index: {}]   ;;  %s1637_s2 = inlined_call_operand.hbm [shape: bf16[3,2,32,32], index: 2, kind: output, shape index: {}]  }
   0x1   :  { %1651 = sst [smem:[#allocation21_spill]] %s1635_s0 }
   0x2   :  { %1652 = sst [smem:[#allocation22_spill]] %s1637_s2 }
   0x3   :  { %7 = vsyncpa [#allocation3], 0 }
   0x4   :  { %9 = vsyncpa [#allocation3 + $0x1], 0 }
   0x5   :  { %10 = vsyncpa [#allocation6], 0 }
   0x6   :  { %12 = vsyncpa [#allocation6 + $0x1], 0 }
   0x7   :  { %13 = vsyncpa [#allocation4], 0 }
   0x8   :  { %15 = vsyncpa [#allocation4 + $0x1], 0  ;;  %s1151_s9 = smov 0   ;;  %s1153_s10 = smov 0  }
   0x9   :  { %s1155_s11 = smov 0   ;;  %s1157_s12 = smov 0  }
   0xa   :  { %s1159_s13 = smov 0   ;;  %s1161_s14 = smov 0  }
   0xb   :  { %s1163_s15 = smov 0   ;;  %s1165_s16 = smov 0  }
   0xc   :  { %s1167_s17 = smov 0   ;;  %s1169_s18 = smov 0  }
   0xd   :  { %s1171_s19 = smov 0   ;;  %s1173_s20 = smov 0  }
   0xe   :  { %s1175_s21 = smov 0   ;;  %s1177_s22 = smov 0  }
   0xf   :  { %s1179_s23 = smov 0   ;;  %s1181_s24 = smov 0  }
  0x10 LB: > { %1653 = sst [smem:[#allocation11_spill]] %s1060_s9  ;;  %s659_s25 = sadd.s32 4294967295, %s1120_s24   ;;  %s1120_s24 = sphi %s1181_s24, %s21_s24   ;;  %s1116_s23 = sphi %s1179_s23, %s1712_s23   ;;  %s1112_s22 = sphi %s1177_s22, %s1698_s22   ;;  %s1108_s21 = sphi %s1175_s21, %s1711_s21   ;;  %s1104_s20 = sphi %s1173_s20, %s1710_s20   ;;  %s1100_s19 = sphi %s1171_s19, %s1696_s19   ;;  %s1096_s18 = sphi %s1169_s18, %s1709_s18   ;;  %s1092_s17 = sphi %s1167_s17, %s1708_s17   ;;  %s1088_s16 = sphi %s1165_s16, %s1707_s16   ;;  %s1084_s15 = sphi %s1163_s15, %s1706_s15   ;;  %s1080_s14 = sphi %s1161_s14, %s1705_s14   ;;  %s1076_s13 = sphi %s1159_s13, %s1704_s13   ;;  %s1072_s12 = sphi %s1157_s12, %s1703_s12   ;;  %s1068_s11 = sphi %s1155_s11, %s1702_s11   ;;  %s1064_s10 = sphi %s1153_s10, %s1701_s10   ;;  %s1060_s9 = sphi %s1151_s9, %s1700_s9  }
  0x11   : > { %1654 = sst [smem:[#allocation12_spill]] %s1096_s18  ;;  %p56_p0 = scmp.ne.s32.totalorder %s1092_s17, %s1088_s16 }
  0x12   : > { %1655 = sst [smem:[#allocation13_spill]] %s1100_s19  ;;  %p1640_p1 = scmp.eq.s32.totalorder %s1120_s24, 0 }
  0x13   : > { %1656 = sst [smem:[#allocation14_spill]] %s1104_s20  ;;  %p62_p2 = scmp.ne.s32.totalorder %s1088_s16, %s1084_s15 }
  0x14   : > { %1657 = sst [smem:[#allocation15_spill]] %s1112_s22  ;;  %p1237_p3 = scmp.eq.s32.totalorder %s659_s25, 0 }
  0x15   : > { %p1243_p4 = por %p1640_p1, %p56_p0  ;;  %p1247_p5 = scmp.eq.s32.totalorder %s659_s25, 11 }
  0x16   : > { %p1253_p6 = por %p1237_p3, %p62_p2  ;;  %p1639_p7 = scmp.lt.s32.totalorder %s1120_s24, 12 }
  0x17   : > { %s1660_s3 = scalar_select %p1247_p5, 1, 0 }
  0x18   : > { %s1661_s4 = scalar_select %p1253_p6, 1, 0 }
  0x19   : > { %s142_s5 = sand.u32 1, %s1092_s17   ;;  %s664_s7 = sshll.u32 %s1112_s22, 1 }
  0x1a   : > { %s663_s6 = sshll.u32 %s142_s5, 4  ;;  %s665_s8 = sshll.u32 %s1116_s23, 2 }
  0x1b   : > { %s146_s15 = scalar_lea.vmem [#allocation2], %s663_s6  ;;  %s152_s27 = sadd.s32 %s665_s8, %s664_s7 }
  0x1c   : > { %s155_s28 = sshll.u32 %s146_s15, 4  ;;  %s666_s26 = sshll.u32 %s152_s27, 7  ;;  %s1261_s28 = int_to_ptr.vmem [resolvable:$true] %s155_s28 }
  0x1d   : > { %p1267_p8 = pnand %p1639_p7, %p1243_p4  ;;  %s1663_s0 = sld [smem:[#allocation21_spill]] }
  0x1e   : > { %s1276_s6 = scalar_lea.sflag [#allocation3], %s142_s5 }
  0x1f   : > { %p896_p10 = pneg %p1267_p8 }
  0x23   : > { %s1274_s19 = scalar_lea.hbm %s1663_s0, %s666_s26  ;;  %s899_s20 = scalar_lea.hbm %s1663_s0, 1024 }
  0x24   : > { %s894_s27 = scalar_lea.hbm %s1274_s19, 256  ;;  %p900_p13 = scmp.lt.u32.totalorder %s1274_s19, %s1663_s0 }
  0x25   : > { %p895_p9 = scmp.ne.s32.totalorder %s1274_s19, %s894_s27  ;;  %p901_p0 = scmp.lt.u32.totalorder %s899_s20, %s894_s27 }
  0x26   : > { %p903_p4 = scmp.lt.u32.totalorder %s894_s27, %s1274_s19 }
  0x27   : > { %p897_p11 = pnand %p896_p10, %p895_p9  ;;  %p902_p2 = por %p901_p0, %p900_p13 }
  0x29   : > { %p898_p12 = pneg %p897_p11  ;;  %p904_p7 = por %p903_p4, %p902_p2 }
  0x2b   : > { %p905_p1 = pnand %p904_p7, %p898_p12 }
  0x2d   : > { %908 = shalt.err (!%p905_p1)
}
  0x2e   : > { %s909_s5 = scalar_lea.vmem %s1261_s28, 256  ;;  %s1122_s8 = smov [#allocation2]  }
  0x2f   : > { %p910_p9 = scmp.ne.s32.totalorder %s1261_s28, %s909_s5  ;;  %s914_s15 = sshll.u32 %s1122_s8, 4  ;;  %s915_s15 = int_to_ptr.vmem [resolvable:$false] %s914_s15 }
  0x30   : > { %s916_s30 = scalar_lea.vmem %s915_s15, 512  ;;  %p917_p5 = scmp.lt.s32.totalorder %s1261_s28, %s915_s15 }
  0x31   : > { %p912_p11 = pnand %p910_p9, %p896_p10  ;;  %p918_p13 = scmp.lt.s32.totalorder %s916_s30, %s909_s5 }
  0x33   : > { %p913_p6 = pneg %p912_p11  ;;  %p919_p0 = por %p918_p13, %p917_p5 }
  0x35   : > { %p920_p2 = pnand %p919_p0, %p913_p6 }
  0x37   : > { %923 = shalt.err (!%p920_p2)
}
  0x38   : > { %s1123_s27 = smov 128   ;;  %s1124_s2 = smov 8  }
  0x39   : > { %727 = dma.hbm_to_vmem [thread:$0]  (!%p1267_p8), %s1274_s19, 256, %s1261_s28, %s1276_s6, %s1123_s27, %s1123_s27, %s1124_s2  }
  0x3a   : > { %p670_p1 = scmp.ge.s32.totalorder %s1120_s24, 1  ;;  %p184_p5 = scmp.lt.s32.totalorder %s1120_s24, 13 }
  0x3b   : > { %s660_s26 = sadd.s32 4294967294, %s1120_s24   ;;  %s33_s7 = sadd.s32 1, %s1108_s21 }
  0x3c   : > { %p1306_p6 = pnand %p670_p1, %p184_p5  ;;  %s75_s5 = sadd.s32 1, %s1080_s14 }
  0x3d   : > { %p34_p7 = scmp.ge.s32.totalorder %s33_s7, 3  ;;  %p82_p10 = scmp.ne.s32.totalorder %s1080_s14, %s1076_s13 }
  0x3e   : > { %p88_p8 = scmp.ne.s32.totalorder %s1076_s13, %s1072_s12  ;;  %s105_s19 = sadd.s32 1, %s1068_s11 }
  0x3f   : > { %s1714_s7 = smov (%p34_p7, %s33_s7), 0  ;;  %s1666_s28 = sadd.s32 1, %s1112_s22 }
  0x40   : > { %1665 = sst [smem:[#allocation16_spill]] %s1714_s7  ;;  %s1716_s28 = smov (!%p34_p7, %s1666_s28), %s1112_s22 }
  0x41   : > { %s72_s25 = ssub.s32 %s1108_s21, %s1714_s7  ;;  %p1667_p12 = scmp.eq.s32.totalorder %s1120_s24, 0 }
  0x42   : > { %p38_p9 = scmp.ge.s32.totalorder %s1716_s28, 2  ;;  %p73_p11 = scmp.eq.s32.totalorder %s72_s25, 0 }
  0x43   : > { %p1327_p4 = por %p82_p10, %p1667_p12  ;;  %p1333_p13 = por %p88_p8, %p1237_p3 }
  0x44   : > { %p115_p0 = scmp.ne.s32.totalorder %s1068_s11, %s1064_s10  ;;  %s1718_s28 = smov (%p38_p9, %s1716_s28), 0 }
  0x45   : > { %s1669_s12 = scalar_select %p1333_p13, 1, 0 }
  0x46   : > { %1670 = sst [smem:[#allocation17_spill]] %s1718_s28  ;;  %s1671_s8 = sadd.s32 1, %s1116_s23 }
  0x47   : > { %s1720_s8 = smov (!%p38_p9, %s1671_s8), %s1116_s23  ;;  %s45_s15 = ssub.s32 %s1112_s22, %s1718_s28 }
  0x48   : > { %p1672_p2 = scmp.ne.s32.totalorder %s1660_s3, 0  ;;  %p42_p5 = scmp.ge.s32.totalorder %s1720_s8, 2 }
  0x49   : > { %p121_p3 = scmp.ne.s32.totalorder %s1064_s10, %s1060_s9  ;;  %p122_p7 = scmp.eq.s32.totalorder %s660_s26, 11 }
  0x4a   : > { %p1348_p1 = por %p1672_p2, %p115_p0  ;;  %s1722_s8 = smov (%p42_p5, %s1720_s8), 0 }
  0x4b   : > { %s1355_s29 = scalar_select %p73_p11, %s1080_s14, %s75_s5  }
  0x4c   : > { %s1673_s30 = scalar_select %p1348_p1, 1, 0 }
  0x4d   : > { %1675 = sst [smem:[#allocation19_spill]] %s1355_s29  ;;  %s165_s27 = sand.u32 1, %s1080_s14  }
  0x4e   : > { %1674 = sst [smem:[#allocation18_spill]] %s1673_s30  ;;  %s44_s2 = ssub.s32 %s1116_s23, %s1722_s8 }
  0x4f   : > { %1676 = sst [smem:[#allocation20_spill]] %s1722_s8  ;;  %s46_s0 = sor.u32 %s45_s15, %s44_s2 }
  0x50   : > { %s100_s3 = sor.u32 %s72_s25, %s44_s2  ;;  %p47_p10 = scmp.eq.s32.totalorder %s46_s0, 0 }
  0x51   : > { %s102_s28 = sor.u32 %s100_s3, %s45_s15  ;;  %p1362_p12 = por %p122_p7, %p121_p3 }
  0x52   : > { %p103_p8 = scmp.eq.s32.totalorder %s102_s28, 0  ;;  %s1678_s22 = sadd.s32 1, %s1092_s17 }
  0x53   : > { %s1677_s7 = scalar_select %p1362_p12, 1, 0 }
  0x54   : > { %s1369_s5 = scalar_select %p47_p10, %s1092_s17, %s1678_s22  }
  0x55   : > { %s1372_s29 = scalar_select %p103_p8, %s1068_s11, %s105_s19  }
  0x56   : > { %s667_s9 = sshll.u32 %s165_s27, 4  ;;  %s696_s26 = sshll.u32 %s1108_s21, 8 }
  0x57   : > { %s1378_s8 = scalar_lea.hbm %s1636_s1, %s696_s26  ;;  %s169_s0 = scalar_lea.vmem [#allocation5], %s667_s9 }
  0x58   : > { %s176_s28 = sshll.u32 %s169_s0, 4  ;;  %p1679_p9 = scmp.lt.s32.totalorder %s1120_s24, 12  ;;  %s1388_s28 = int_to_ptr.vmem [resolvable:$true] %s176_s28 }
  0x59   : > { %s1390_s19 = scalar_lea.sflag [#allocation6], %s165_s27  ;;  %s924_s18 = scalar_lea.hbm %s1378_s8, 256 }
  0x5a   : > { %p1384_p11 = pnand %p1679_p9, %p1327_p4  ;;  %p925_p0 = scmp.ne.s32.totalorder %s1378_s8, %s924_s18 }
  0x5b   : > { %s929_s6 = scalar_lea.hbm %s1636_s1, 768  ;;  %p930_p4 = scmp.lt.u32.totalorder %s1378_s8, %s1636_s1 }
  0x5c   : > { %p926_p2 = pneg %p1384_p11  ;;  %p931_p7 = scmp.lt.u32.totalorder %s929_s6, %s924_s18 }
  0x5d   : > { %p933_p8 = scmp.lt.u32.totalorder %s924_s18, %s1378_s8 }
  0x5e   : > { %p927_p5 = pnand %p926_p2, %p925_p0  ;;  %p932_p10 = por %p931_p7, %p930_p4 }
  0x60   : > { %p928_p3 = pneg %p927_p5  ;;  %p934_p9 = por %p933_p8, %p932_p10 }
  0x62   : > { %p935_p12 = pnand %p934_p9, %p928_p3 }
  0x64   : > { %938 = shalt.err (!%p935_p12)
}
  0x65   : > { %s939_s27 = scalar_lea.vmem %s1388_s28, 256  ;;  %s1125_s2 = smov [#allocation5]  }
  0x66   : > { %p940_p0 = scmp.ne.s32.totalorder %s1388_s28, %s939_s27  ;;  %s944_s3 = sshll.u32 %s1125_s2, 4  ;;  %s945_s3 = int_to_ptr.vmem [resolvable:$false] %s944_s3 }
  0x67   : > { %s946_s26 = scalar_lea.vmem %s945_s3, 512  ;;  %p947_p13 = scmp.lt.s32.totalorder %s1388_s28, %s945_s3 }
  0x68   : > { %p942_p5 = pnand %p940_p0, %p926_p2  ;;  %p948_p4 = scmp.lt.s32.totalorder %s946_s26, %s939_s27 }
  0x6a   : > { %p943_p1 = pneg %p942_p5  ;;  %p949_p7 = por %p948_p4, %p947_p13 }
  0x6c   : > { %p950_p10 = pnand %p949_p7, %p943_p1 }
  0x6e   : > { %953 = shalt.err (!%p950_p10)
}
  0x6f   : > { %s1126_s0 = smov 64   ;;  %s1127_s18 = smov 4  }
  0x70   : > { %730 = dma.hbm_to_vmem [thread:$0]  (!%p1384_p11), %s1378_s8, 256, %s1388_s28, %s1390_s19, %s1126_s0, %s1126_s0, %s1127_s18  }
  0x71   : > { %188 = sbr.rel (%p1306_p6) target bundleno = 948 (0x3b4), region = 28  ;;  %s190_s9 = sand.u32 (!%p1306_p6), 1, %s1088_s16  }
  0x72   : > { %s671_s25 = sshll.u32 (!%p1306_p6), %s190_s9, 4  ;;  %s191_s6 = scalar_lea.sflag (!%p1306_p6), [#allocation3], %s190_s9 }
  0x73   : > { %s194_s15 = scalar_lea.vmem (!%p1306_p6), [#allocation2], %s671_s25  ;;  %p1681_p13 = scmp.ne.s32.totalorder (!%p1306_p6), %s1661_s4, 0 }
  0x78   : > { %1047 = dma.done.wait (%p1681_p13), %s191_s6, 256  }
  0x79   : > { %1049 = vsyncadd (%p1681_p13), %s191_s6, 4294967040  ;;  %s199_s30 = sand.u32 1, %s1076_s13   ;;  %p1682_p1 = scmp.ne.s32.totalorder %s1669_s12, 0 }
  0x7a   : > { %s672_s27 = sshll.u32 %s199_s30, 4  ;;  %s200_s22 = scalar_lea.sflag [#allocation6], %s199_s30 }
  0x7b   : > { %s203_s8 = scalar_lea.vmem [#allocation5], %s672_s27 }
  0x7c   : > { %1051 = dma.done.wait (%p1682_p1), %s200_s22, 256  }
  0x7d   : > { %1053 = vsyncadd (%p1682_p1), %s200_s22, 4294967040  ;;  %s226_s20 = sand.u32 1, %s1064_s10   ;;  %v1128_v0 = vmov 0.0   ;;  %vm1129_vm0 = vmmov 0   ;;  %v876_v1 = vld [vmem:[%s203_s8] sm:$0xff]   ;;  %v877_v2 = vld [vmem:[%s203_s8 + $0x8] sm:$0xff]  }
  0x7e   : > { %s673_s28 = sshll.u32 %s226_s20, 3  ;;  %710 = vmatprep.subr.bf16.mxu0 %v1128_v0  ;;  %714 = vmatprep.mubr.msk.bf16.mxu0 %vm1129_vm0, %v1128_v0  ;;  %v232_v3 = vld [vmem:[%s194_s15] sm:$0xff]  ;;  %v233_v4 = vld [vmem:[%s194_s15 + $0x8] sm:$0xff]  ;;  %vm251_vm1 = vcmask 261120   ;;  %s1683_s12 = sld [smem:[#allocation12_spill]] }
  0x7f   : > { %711 = vmatpush3.bf16.msra.mxu0 %v876_v1  ;;  %v234_v5 = vpack.c.bf16 %v233_v4, %v232_v3  ;;  %s1437_s4 = scalar_lea.vmem [#allocation7], %s673_s28 }
  0x80   : > { %712 = vmatprep.subr.bf16.mxu0 %v1128_v0 }
  0x83   : > { %713 = vmatpush3.bf16.msra.mxu0 %v877_v2 }
  0x84   : > { %p677_p6 = scmp.ne.s32.totalorder %s1683_s12, 2 }
  0x85   : > { %vm308_vm2 = vcmask (!%p677_p6), 257024  }
  0x86   : > { %715 = vmatmul.mubr.msk.bf16.vlgmr.msra.gmra.mrb[0].mxu0 %vm251_vm1, %v234_v5 }
 0x156   : > { %299 = sbr.rel (%p677_p6) target bundleno = 351 (0x15f), region = 40 }
 0x159   : > { %v1433_v6 = vpop.f32.mrb[0].mxu0 }
 0x15a   : > { %v716_v7 = vpop.f32.mrb[1].mxu0  ;;  %v697_v10 = vpack.c.bf16 (!%p677_p6), %v1433_v6, %v1433_v6 }
 0x15b   : > { %v1435_v8 = vpop.f32.mrb[2].mxu0 }
 0x15c   : > { %v717_v9 = vpop.f32.mrb[3].mxu0  ;;  %v698_v11 = vpack.c.bf16 (!%p677_p6), %v1435_v8, %v1435_v8  ;;  %309 = vst.msk [vmem:[%s1437_s4] sm:$0xf] (!%p677_p6), %vm308_vm2, %v697_v10 }
 0x15e   : > { %310 = vst.msk [vmem:[%s1437_s4 + $0x4] sm:$0xf] %vm308_vm2, %v698_v11 }
 0x15f PF: > { %s1684_s19 = sld [smem:[#allocation12_spill]] }
 0x165   : > { %p680_p12 = scmp.ge.s32.totalorder %s1684_s19, 2 }
 0x166   : > { %s1130_s2 = smov (!%p680_p12), 120   ;;  %s1131_s3 = smov (!%p680_p12), 112   ;;  %vm317_vm3 = vcmask (!%p680_p12), 64512   ;;  %vm356_vm4 = vcmask (!%p680_p12), 60416   ;;  %vm411_vm5 = vcmask (!%p680_p12), 126016   ;;  %vm464_vm6 = vcmask (!%p680_p12), 191616  }
 0x167   : > { %314 = sbr.rel (%p680_p12) target bundleno = 915 (0x393), region = 44  ;;  %361 = vrot.lane.b32.xlu0 (!%p680_p12), %v1433_v6, %s1130_s2  ;;  %414 = vrot.lane.b32.xlu1 (!%p680_p12), %v1433_v6, %s1131_s3  ;;  %s1132_s26 = smov (!%p680_p12), 104   ;;  %v318_v24 = vsel (!%p680_p12), %vm317_vm3, %v1433_v6, 0.0  ;;  %v321_v25 = vsel (!%p680_p12), %vm317_vm3, %v1435_v8, 0.0  ;;  %vm517_vm7 = vcmask (!%p680_p12), 257216  }
 0x168   : > { %s1685_s0 = sld [smem:[#allocation12_spill]] (!%p680_p12) }
 0x16b   : > { %363 = vrot.lane.b32.xlu0 (!%p680_p12), %v1435_v8, %s1130_s2  ;;  %416 = vrot.lane.b32.xlu1 (!%p680_p12), %v1435_v8, %s1131_s3 }
 0x16e   : > { %p315_p11 = scmp.eq.s32.totalorder %s1685_s0, 0 }
 0x16f   : > { %467 = vrot.lane.b32.xlu0 %v1433_v6, %s1132_s26  ;;  %469 = vrot.lane.b32.xlu1 %v1435_v8, %s1132_s26 }
 0x170   : > { %s316_s18 = scalar_select %p315_p11, 0.35355338, 1.0 }
 0x1d9   : > { %v362_v12 = vpop.permute.xlu0 %361  ;;  %v415_v13 = vpop.permute.xlu1 %414 }
 0x1da   : > { %v367_v14 = vsel %vm317_vm3, %v362_v12, 0.0  ;;  %v420_v15 = vsel %vm317_vm3, %v415_v13, 0.0 }
 0x1db   : > { %368 = vadd.xlane.f32.xlu0 %v367_v14 }
 0x1dd   : > { %v364_v16 = vpop.permute.xlu0 %363  ;;  %v417_v17 = vpop.permute.xlu1 %416 }
 0x1de   : > { %v370_v18 = vsel %vm317_vm3, %v364_v16, 0.0  ;;  %v423_v19 = vsel %vm317_vm3, %v417_v17, 0.0 }
 0x1df   : > { %371 = vadd.xlane.f32.xlu1 %v370_v18  ;;  %421 = vadd.xlane.f32.xlu0 %v420_v15  ;;  %v1516_v15 = vstv %s316_s18 }
 0x1e1   : > { %v468_v20 = vpop.permute.xlu0 %467  ;;  %v470_v21 = vpop.permute.xlu1 %469 }
 0x1e2   : > { %v473_v22 = vsel %vm317_vm3, %v468_v20, 0.0  ;;  %v476_v23 = vsel %vm317_vm3, %v470_v21, 0.0 }
 0x1e3   : > { %474 = vadd.xlane.f32.xlu1 %v473_v22  ;;  %424 = vadd.xlane.f32.xlu0 %v423_v19 }
 0x1e7   : > { %477 = vadd.xlane.f32.xlu0 %v476_v23  ;;  %319 = vadd.xlane.f32.xlu1 %v318_v24 }
 0x1eb   : > { %322 = vadd.xlane.f32.xlu0 %v321_v25 }
 0x268   : > { %v369_v26 = vpop.xlane.xlu0 %368 }
 0x269   : > { %v373_v27 = vmul.f32 0.125, %v369_v26 }
 0x26b   : > { %v1470_v28 = vsub.f32 %v1433_v6, %v373_v27 }
 0x26c   : > { %v372_v29 = vpop.xlane.xlu1 %371  ;;  %v422_v30 = vpop.xlane.xlu0 %421 }
 0x26d   : > { %v377_v31 = vmul.f32 %v1470_v28, %v1470_v28  ;;  %v374_v32 = vmul.f32 0.125, %v372_v29  ;;  %v426_v33 = vmul.f32 0.125, %v422_v30 }
 0x26f   : > { %v1475_v34 = vsub.f32 %v1435_v8, %v374_v32  ;;  %v1478_v35 = vsub.f32 %v1433_v6, %v426_v33  ;;  %381 = vrot.lane.b32.xlu1 %v377_v31, %s1130_s2 }
 0x270   : > { %v475_v36 = vpop.xlane.xlu1 %474  ;;  %v425_v37 = vpop.xlane.xlu0 %424 }
 0x271   : > { %v378_v38 = vmul.f32 %v1475_v34, %v1475_v34  ;;  %v430_v39 = vmul.f32 %v1478_v35, %v1478_v35  ;;  %v479_v40 = vmul.f32 0.125, %v475_v36  ;;  %v427_v41 = vmul.f32 0.125, %v425_v37 }
 0x273   : > { %v1486_v42 = vsub.f32 %v1433_v6, %v479_v40  ;;  %v1489_v43 = vsub.f32 %v1435_v8, %v427_v41  ;;  %383 = vrot.lane.b32.xlu0 %v378_v38, %s1130_s2  ;;  %434 = vrot.lane.b32.xlu1 %v430_v39, %s1131_s3 }
 0x274   : > { %v478_v44 = vpop.xlane.xlu0 %477  ;;  %v320_v50 = vpop.xlane.xlu1 %319 }
 0x275   : > { %v483_v45 = vmul.f32 %v1486_v42, %v1486_v42  ;;  %v431_v46 = vmul.f32 %v1489_v43, %v1489_v43  ;;  %v480_v47 = vmul.f32 0.125, %v478_v44  ;;  %v325_v51 = vmul.f32 0.125, %v320_v50 }
 0x277   : > { %v1498_v48 = vsub.f32 %v1435_v8, %v480_v47  ;;  %487 = vrot.lane.b32.xlu0 %v483_v45, %s1132_s26  ;;  %436 = vrot.lane.b32.xlu1 %v431_v46, %s1131_s3  ;;  %v327_v52 = vsub.f32 %v1433_v6, %v325_v51 }
 0x278   : > { %v323_v53 = vpop.xlane.xlu0 %322 }
 0x279   : > { %v484_v49 = vmul.f32 %v1498_v48, %v1498_v48  ;;  %v329_v54 = vmul.f32 %v327_v52, %v327_v52  ;;  %v326_v55 = vmul.f32 0.125, %v323_v53 }
 0x27b   : > { %489 = vrot.lane.b32.xlu1 %v484_v49, %s1132_s26  ;;  %v331_v56 = vsel %vm317_vm3, %v329_v54, 0.0  ;;  %v328_v57 = vsub.f32 %v1435_v8, %v326_v55 }
 0x27d   : > { %v330_v58 = vmul.f32 %v328_v57, %v328_v57 }
 0x27f   : > { %v334_v59 = vsel %vm317_vm3, %v330_v58, 0.0 }
 0x296   : > { %332 = vadd.xlane.f32.xlu0 %v331_v56 }
 0x29f   : > { %335 = vadd.xlane.f32.xlu1 %v334_v59 }
 0x2e1   : > { %v382_v60 = vpop.permute.xlu1 %381 }
 0x2e2   : > { %v387_v61 = vsel %vm317_vm3, %v382_v60, 0.0 }
 0x2e3   : > { %388 = vadd.xlane.f32.xlu0 %v387_v61 }
 0x2e5   : > { %v384_v62 = vpop.permute.xlu0 %383  ;;  %v435_v63 = vpop.permute.xlu1 %434 }
 0x2e6   : > { %v390_v0 = vsel %vm317_vm3, %v384_v62, 0.0  ;;  %v440_v1 = vsel %vm317_vm3, %v435_v63, 0.0 }
 0x2e7   : > { %391 = vadd.xlane.f32.xlu0 %v390_v0  ;;  %441 = vadd.xlane.f32.xlu1 %v440_v1 }
 0x2e9   : > { %v488_v2 = vpop.permute.xlu0 %487  ;;  %v437_v3 = vpop.permute.xlu1 %436 }
 0x2ea   : > { %v493_v4 = vsel %vm317_vm3, %v488_v2, 0.0  ;;  %v443_v5 = vsel %vm317_vm3, %v437_v3, 0.0 }
 0x2eb   : > { %494 = vadd.xlane.f32.xlu1 %v493_v4  ;;  %444 = vadd.xlane.f32.xlu0 %v443_v5 }
 0x2ed   : > { %v490_v6 = vpop.permute.xlu1 %489 }
 0x2ee   : > { %v496_v7 = vsel %vm317_vm3, %v490_v6, 0.0 }
 0x2ef   : > { %497 = vadd.xlane.f32.xlu0 %v496_v7 }
 0x323   : > { %v333_v8 = vpop.xlane.xlu0 %332 }
 0x324   : > { %v337_v9 = vmul.f32 0.125, %v333_v8 }
 0x326   : > { %v339_v10 = vadd.f32 1e-05, %v337_v9 }
 0x328   : > { %878 = vrsqrt.f32 %v339_v10 }
 0x32c   : > { %v336_v11 = vpop.xlane.xlu1 %335 }
 0x32d   : > { %v338_v12 = vmul.f32 0.125, %v336_v11 }
 0x32f   : > { %v340_v13 = vadd.f32 1e-05, %v338_v12 }
 0x331   : > { %880 = vrsqrt.f32 %v340_v13 }
 0x332   : > { %v879_v14 = vpop.eup %878 }
 0x333   : > { %v343_v16 = vmul.f32 %v879_v14, %v327_v52 }
 0x335   : > { %v346_v17 = vmul.f32 %v1516_v15, %v343_v16 }
 0x337   : > { %v699_v18 = vpack.c.bf16 %v346_v17, %v346_v17 }
 0x339   : > { %357 = vst.msk [vmem:[%s1437_s4] sm:$0xf] %vm356_vm4, %v699_v18 }
 0x33b   : > { %v881_v19 = vpop.eup %880 }
 0x33c   : > { %v344_v20 = vmul.f32 %v881_v19, %v328_v57 }
 0x33e   : > { %v347_v21 = vmul.f32 %v1516_v15, %v344_v20 }
 0x340   : > { %v700_v22 = vpack.c.bf16 %v347_v21, %v347_v21 }
 0x342   : > { %358 = vst.msk [vmem:[%s1437_s4 + $0x4] sm:$0xf] %vm356_vm4, %v700_v22 }
 0x370   : > { %v389_v23 = vpop.xlane.xlu0 %388 }
 0x371   : > { %v393_v24 = vmul.f32 0.125, %v389_v23 }
 0x373   : > { %v395_v25 = vadd.f32 1e-05, %v393_v24 }
 0x374   : > { %v392_v26 = vpop.xlane.xlu0 %391  ;;  %v442_v27 = vpop.xlane.xlu1 %441 }
 0x375   : > { %882 = vrsqrt.f32 %v395_v25  ;;  %v394_v29 = vmul.f32 0.125, %v392_v26  ;;  %v446_v30 = vmul.f32 0.125, %v442_v27 }
 0x377   : > { %v396_v31 = vadd.f32 1e-05, %v394_v29  ;;  %v448_v32 = vadd.f32 1e-05, %v446_v30 }
 0x378   : > { %v445_v33 = vpop.xlane.xlu0 %444  ;;  %v495_v36 = vpop.xlane.xlu1 %494 }
 0x379   : > { %884 = vrsqrt.f32 %v396_v31  ;;  %v447_v37 = vmul.f32 0.125, %v445_v33  ;;  %v499_v38 = vmul.f32 0.125, %v495_v36 }
 0x37a   : > { %886 = vrsqrt.f32 %v448_v32 }
 0x37b   : > { %v449_v39 = vadd.f32 1e-05, %v447_v37  ;;  %v501_v40 = vadd.f32 1e-05, %v499_v38 }
 0x37c   : > { %v498_v41 = vpop.xlane.xlu0 %497 }
 0x37d   : > { %888 = vrsqrt.f32 %v449_v39  ;;  %v500_v44 = vmul.f32 0.125, %v498_v41 }
 0x37e   : > { %890 = vrsqrt.f32 %v501_v40 }
 0x37f   : > { %v883_v45 = vpop.eup %882  ;;  %v502_v46 = vadd.f32 1e-05, %v500_v44 }
 0x380   : > { %v399_v47 = vmul.f32 %v883_v45, %v1470_v28 }
 0x381   : > { %892 = vrsqrt.f32 %v502_v46 }
 0x382   : > { %v401_v49 = vmul.f32 %v399_v47, %v1516_v15 }
 0x383   : > { %v885_v50 = vpop.eup %884 }
 0x384   : > { %v887_v51 = vpop.eup %886  ;;  %v701_v52 = vpack.c.bf16 %v401_v49, %v401_v49  ;;  %v400_v53 = vmul.f32 %v885_v50, %v1475_v34 }
 0x385   : > { %v452_v54 = vmul.f32 %v887_v51, %v1478_v35 }
 0x386   : > { %412 = vst.msk [vmem:[%s1437_s4] sm:$0xf] %vm411_vm5, %v701_v52  ;;  %v402_v55 = vmul.f32 %v400_v53, %v1516_v15 }
 0x387   : > { %v889_v56 = vpop.eup %888  ;;  %v454_v57 = vmul.f32 %v452_v54, %v1516_v15 }
 0x388   : > { %v891_v28 = vpop.eup %890  ;;  %v702_v58 = vpack.c.bf16 %v402_v55, %v402_v55  ;;  %v453_v59 = vmul.f32 %v889_v56, %v1489_v43 }
 0x389   : > { %v703_v60 = vpack.c.bf16 %v454_v57, %v454_v57  ;;  %v505_v61 = vmul.f32 %v891_v28, %v1486_v42 }
 0x38a   : > { %413 = vst.msk [vmem:[%s1437_s4 + $0x4] sm:$0xf] %vm411_vm5, %v702_v58  ;;  %v455_v34 = vmul.f32 %v453_v59, %v1516_v15 }
 0x38b   : > { %v893_v35 = vpop.eup %892  ;;  %465 = vst.msk [vmem:[%s1437_s4] sm:$0xf] %vm464_vm6, %v703_v60  ;;  %v507_v62 = vmul.f32 %v505_v61, %v1516_v15 }
 0x38c   : > { %v704_v63 = vpack.c.bf16 %v455_v34, %v455_v34  ;;  %v506_v0 = vmul.f32 %v893_v35, %v1498_v48 }
 0x38d   : > { %v705_v1 = vpack.c.bf16 %v507_v62, %v507_v62 }
 0x38e   : > { %466 = vst.msk [vmem:[%s1437_s4 + $0x4] sm:$0xf] %vm464_vm6, %v704_v63  ;;  %v508_v2 = vmul.f32 %v506_v0, %v1516_v15 }
 0x38f   : > { %518 = vst.msk [vmem:[%s1437_s4] sm:$0xf] %vm517_vm7, %v705_v1 }
 0x390   : > { %v706_v43 = vpack.c.bf16 %v508_v2, %v508_v2 }
 0x392   : > { %519 = vst.msk [vmem:[%s1437_s4 + $0x4] sm:$0xf] %vm517_vm7, %v706_v43 }
 0x393 PF: > { %s1686_s9 = sld [smem:[#allocation13_spill]]  ;;  %s1687_s25 = sld [smem:[#allocation14_spill]] }
 0x394   : > { %s1688_s6 = sld [smem:[#allocation12_spill]]  ;;  %s1689_s15 = sld [smem:[#allocation18_spill]] }
 0x395   : > { %s538_s28 = sshll.u32 %s1437_s4, 4  ;;  %s1690_s26 = sld [smem:[#allocation22_spill]]  ;;  %s1544_s28 = int_to_ptr.vmem [resolvable:$true] %s538_s28 }
 0x396   : > { %s1553_s18 = scalar_lea.sflag [#allocation4], %s226_s20  ;;  %s1133_s4 = smov [#allocation7]  }
 0x399   : > { %s690_s30 = sshll.u32 %s1686_s9, 1  ;;  %s691_s27 = sshll.u32 %s1687_s25, 2 }
 0x39a   : > { %s692_s22 = sshll.u32 %s1688_s6, 3  ;;  %s533_s8 = sadd.s32 %s691_s27, %s690_s30 }
 0x39b   : > { %s535_s12 = sadd.s32 %s692_s22, %s533_s8  ;;  %s954_s9 = scalar_lea.vmem %s1544_s28, 128 }
 0x39c   : > { %s693_s19 = sshll.u32 %s535_s12, 6  ;;  %p955_p2 = scmp.ne.s32.totalorder %s1544_s28, %s954_s9 }
 0x39d   : > { %s1549_s0 = scalar_lea.hbm %s1690_s26, %s693_s19  ;;  %p1691_p3 = scmp.ne.s32.totalorder %s1689_s15, 0 }
 0x39e   : > { %s958_s25 = sshll.u32 %s1133_s4, 4  ;;  %s959_s25 = int_to_ptr.vmem [resolvable:$false] %s958_s25 }
 0x39f   : > { %p956_p8 = pnand %p955_p2, %p1691_p3  ;;  %s960_s6 = scalar_lea.vmem %s959_s25, 256 }
 0x3a0   : > { %p961_p0 = scmp.lt.s32.totalorder %s1544_s28, %s959_s25  ;;  %p962_p5 = scmp.lt.s32.totalorder %s960_s6, %s954_s9 }
 0x3a1   : > { %p957_p9 = pneg %p956_p8 }
 0x3a2   : > { %p963_p4 = por %p962_p5, %p961_p0 }
 0x3a4   : > { %p964_p7 = pnand %p963_p4, %p957_p9 }
 0x3a6   : > { %967 = shalt.err (!%p964_p7)
}
 0x3a7   : > { %s968_s20 = scalar_lea.hbm %s1549_s0, 128  ;;  %s972_s22 = scalar_lea.hbm %s1690_s26, 1536 }
 0x3a8   : > { %p969_p10 = scmp.ne.s32.totalorder %s1549_s0, %s968_s20  ;;  %p973_p6 = scmp.lt.u32.totalorder %s1549_s0, %s1690_s26 }
 0x3a9   : > { %p974_p12 = scmp.lt.u32.totalorder %s972_s22, %s968_s20  ;;  %p976_p2 = scmp.lt.u32.totalorder %s968_s20, %s1549_s0 }
 0x3aa   : > { %p970_p13 = pnand %p969_p10, %p1691_p3 }
 0x3ab   : > { %p975_p11 = por %p974_p12, %p973_p6 }
 0x3ac   : > { %p971_p1 = pneg %p970_p13 }
 0x3ad   : > { %p977_p8 = por %p976_p2, %p975_p11 }
 0x3af   : > { %p978_p9 = pnand %p977_p8, %p971_p1 }
 0x3b1   : > { %981 = shalt.err (!%p978_p9)
}
 0x3b2   : > { %s1134_s19 = smov 64   ;;  %s1135_s2 = smov 4  }
 0x3b3   : > { %722 = dma.vmem_to_hbm [thread:$0]  (%p1691_p3), %s1544_s28, 128, %s1549_s0, %s1553_s18, %s1134_s19, %s1134_s19, %s1135_s2  }
 0x3b4 PF: > { %s1692_s3 = sld [smem:[#allocation11_spill]]  ;;  %p736_p0 = scmp.ge.s32.totalorder %s1120_s24, 2 }
 0x3b5   : > { %p1693_p5 = scmp.ne.s32.totalorder %s1677_s7, 0 }
 0x3b7   : > { %p732_p4 = pnand %p736_p0, %p1693_p5 }
 0x3ba   : > { %s553_s9 = sand.u32 1, %s1692_s3  }
 0x3bb   : > { %s554_s4 = scalar_lea.sflag [#allocation4], %s553_s9 }
 0x3bc   : > { %1055 = dma.done.wait (!%p732_p4), %s554_s4, 128  }
 0x3bd   : > { %1057 = vsyncadd (!%p732_p4), %s554_s4, 4294967168  ;;  %s21_s24 = sadd.s32 1, %s1120_s24   ;;  %s1695_s15 = sld [smem:[#allocation19_spill]] }
 0x3be   : > { %p1582_p7 = scmp.ge.s32.totalorder %s21_s24, 14   ;;  %s1696_s19 = sld [smem:[#allocation15_spill]] }
 0x3bf   : > { %s1697_s7 = sld [smem:[#allocation16_spill]]  ;;  %s1698_s22 = sld [smem:[#allocation17_spill]] }
 0x3c0   : > { %s1699_s28 = sld [smem:[#allocation20_spill]]  ;;  %s1700_s9 = smov %s1064_s10 }
 0x3c1   : > { %s1701_s10 = smov %s1068_s11  ;;  %s1702_s11 = smov %s1372_s29 }
 0x3c2   : > { %s1703_s12 = smov %s1076_s13  ;;  %s1704_s13 = smov %s1080_s14 }
 0x3c3   : > { %s1705_s14 = smov %s1695_s15  ;;  %s1706_s15 = smov %s1088_s16 }
 0x3c4   : > { %s1707_s16 = smov %s1092_s17  ;;  %s1708_s17 = smov %s1369_s5 }
 0x3c5   : > { %s1709_s18 = smov %s1108_s21  ;;  %s1710_s20 = smov %s1116_s23 }
 0x3c6   : > { %s1711_s21 = smov %s1697_s7  ;;  %s1712_s23 = smov %s1699_s28 }
 0x3c7   :  { %20 = sbr.rel (!%p1582_p7) target bundleno = 16 (0x10), region = 94 }
 0x3ce   :  { %559 = vsyncpa [#allocation3], 1 }
 0x3cf   :  { %561 = vsyncpa [#allocation3 + $0x1], 1 }
 0x3d0   :  { %562 = vsyncpa [#allocation6], 1 }
 0x3d1   :  { %564 = vsyncpa [#allocation6 + $0x1], 1 }
 0x3d2   :  { %565 = vsyncpa [#allocation4], 1 }
 0x3d3   :  { %567 = vsyncpa [#allocation4 + $0x1], 1 }

</bundles_post_ra>
